<compile_context>
chip_gen: v7x
topology: tpu7x:2x2x1
jax: 0.10.0
libtpu: 0.0.40
codegen_flags: <defaults>
</compile_context>

<pallas_src>
import jax
import jax.numpy as jnp
from jax.experimental import pallas as pl
from jax.experimental.pallas import tpu as pltpu

# ----- small demo hyperparameters (consistent with the module definition) -----
BATCH = 2
N_BAND = 4        # filter bands
N_CHANNEL = 4     # EEG channels
N_TIME = 32       # time samples (divisible by STRIDE)
M = 8             # spatial filters per band
STRIDE = 4        # temporal variance windows
N_CLASS = 2
SEG = N_TIME // STRIDE        # samples per variance window
NBM = N_BAND * M              # 32 spatial-filter outputs
FEAT = NBM * STRIDE           # 128 linear-layer input features

# Shape guards (the kernel assumes these; fail loudly if dims are swapped).
assert N_TIME % STRIDE == 0, "n_time must be divisible by stride"
assert N_TIME % 8 == 0, "per-batch time tile must be sublane (8) aligned"
assert SEG > 1, "unbiased variance needs >1 sample per window"


def fbcnet_kernel(x_ref, w_bd_ref, bias_ref, pt_ref, w_lin_ref, b_lin_ref, o_ref):
    # Per grid step (one batch element):
    # x_ref     : (N_TIME, N_BAND*N_CHANNEL)  bf16, time on sublanes
    # w_bd_ref  : (N_BAND*N_CHANNEL, NBM)     bf16 block-diag conv weight, BN folded
    # bias_ref  : (1, NBM)                    fp32 folded conv-bias + BN shift
    # pt_ref    : (STRIDE, N_TIME)            fp32 0/1 window-pooling matrix
    # w_lin_ref : (FEAT, N_CLASS)             bf16 permuted linear weight (rows s*NBM+r)
    # b_lin_ref : (1, N_CLASS)                fp32 linear bias
    # o_ref     : (1, 1, N_CLASS)             fp32 log-softmax output

    # --- SCB: grouped spatial conv as one block-diag matmul (bf16 MXU, f32 acc) ---
    y = jnp.dot(x_ref[...], w_bd_ref[...], preferred_element_type=jnp.float32)
    y = y + bias_ref[...]                      # (N_TIME, NBM) fp32
    y = y * jax.nn.sigmoid(y)                  # swish, fp32 elementwise

    # --- LogVarLayer: per-window unbiased variance via ONE fused pooling matmul ---
    # Pre-center each feature column (variance is shift-invariant) so the
    # single-pass sum / sum-of-squares formula stays well conditioned.
    y_c = y - jnp.mean(y, axis=0, keepdims=True)
    pooled = jnp.dot(pt_ref[...],
                     jnp.concatenate([y_c, y_c * y_c], axis=-1),
                     preferred_element_type=jnp.float32)        # (STRIDE, 2*NBM)
    seg_sum = pooled[:, :NBM]
    seg_sq = pooled[:, NBM:]
    var = (seg_sq - seg_sum * seg_sum * (1.0 / SEG)) * (1.0 / (SEG - 1))  # unbiased
    logv = jnp.log(jnp.clip(var, 1e-6, 1e6))                    # (STRIDE, NBM) fp32

    # --- LinearWithConstraint + LogSoftmax ---
    # Accumulate STRIDE tiny (1,NBM)@(NBM,N_CLASS) dots instead of reshaping
    # (STRIDE,NBM)->(1,FEAT) (a sublane->lane relayout on TPU).
    logv_mx = logv.astype(jnp.bfloat16)
    logits = b_lin_ref[...]                                     # (1, N_CLASS) fp32
    for s in range(STRIDE):                                     # static unroll, tiny
        logits = logits + jnp.dot(logv_mx[s:s + 1, :],
                                  w_lin_ref[s * NBM:(s + 1) * NBM, :],
                                  preferred_element_type=jnp.float32)
    mx = jnp.max(logits, axis=-1, keepdims=True)
    sh = logits - mx
    lse = jnp.log(jnp.sum(jnp.exp(sh), axis=-1, keepdims=True))
    o_ref[0] = (sh - lse).astype(o_ref.dtype)


def fold_params(params):
    """Host-side (one-time) folding: BN into conv weights, block-diag conv matrix,
    per-batch-tile pooling matrix, permuted linear weight, bf16 MXU operands."""
    w_scb, b_scb, bn_scale, bn_shift, w_lin, b_lin = params

    # Conv weight with BN scale folded: (N_BAND, M, N_CHANNEL)
    w_fold = w_scb * bn_scale[:, :, None]
    # Block-diagonal (N_BAND*N_CHANNEL, N_BAND*M): rows = (band, chan), cols = (band, m)
    blocks = jnp.transpose(w_fold, (0, 2, 1))                   # (band, chan, m)
    eye = jnp.eye(N_BAND, dtype=w_scb.dtype)
    w_bd = jnp.einsum('bcm,bd->bcdm', blocks, eye).reshape(N_BAND * N_CHANNEL, NBM)

    # Folded bias: conv bias passed through eval-mode BN.
    bias_fold = (b_scb * bn_scale + bn_shift).reshape(1, NBM)

    # Per-batch-tile window pooling: pt[s, t] = 1 iff t // SEG == s.
    t = jnp.arange(N_TIME)
    s = jnp.arange(STRIDE)
    pt = (s[:, None] == (t[None, :] // SEG)).astype(jnp.float32)

    # Linear weight permuted so kernel feature index s*NBM + r corresponds to the
    # torch flatten order r*STRIDE + s (r = band*M + m).
    w_lin_perm = jnp.transpose(
        w_lin.reshape(N_CLASS, NBM, STRIDE), (2, 1, 0)).reshape(FEAT, N_CLASS)

    # bf16 for MXU operands only; biases / pooling matrix stay fp32.
    return (w_bd.astype(jnp.bfloat16), bias_fold, pt,
            w_lin_perm.astype(jnp.bfloat16), b_lin)


def fbcnet_forward(x, kernel_params):
    w_bd, bias_fold, pt, w_lin_perm, b_lin = kernel_params
    # Layout plumbing only: (B, band, chan, time) -> (B*time, band*chan), rows
    # grouped by batch so each grid step sees a (N_TIME, band*chan) tile.
    x_in = jnp.transpose(x, (0, 3, 1, 2)).reshape(
        BATCH * N_TIME, N_BAND * N_CHANNEL).astype(jnp.bfloat16)

    flops = BATCH * (2 * N_TIME * N_BAND * N_CHANNEL * NBM        # SCB matmul
                     + 2 * STRIDE * N_TIME * 2 * NBM              # fused pooling matmul
                     + 2 * STRIDE * NBM * N_CLASS                 # final linear
                     + 8 * N_TIME * NBM)                          # swish / variance VPU
    transcendentals = BATCH * (N_TIME * NBM + STRIDE * NBM + N_CLASS + 1)
    bytes_accessed = (x_in.size * 2 + w_bd.size * 2 + bias_fold.size * 4
                      + pt.size * 4 + w_lin_perm.size * 2 + b_lin.size * 4
                      + BATCH * N_CLASS * 4)

    out = pl.pallas_call(
        fbcnet_kernel,
        out_shape=jax.ShapeDtypeStruct((BATCH, 1, N_CLASS), jnp.float32),
        grid=(BATCH,),
        in_specs=[
            pl.BlockSpec((N_TIME, N_BAND * N_CHANNEL), lambda b: (b, 0)),   # x tile
            pl.BlockSpec((N_BAND * N_CHANNEL, NBM), lambda b: (0, 0)),      # w_bd
            pl.BlockSpec((1, NBM), lambda b: (0, 0)),                       # bias
            pl.BlockSpec((STRIDE, N_TIME), lambda b: (0, 0)),               # pooling
            pl.BlockSpec((FEAT, N_CLASS), lambda b: (0, 0)),                # w_lin
            pl.BlockSpec((1, N_CLASS), lambda b: (0, 0)),                   # b_lin
        ],
        out_specs=pl.BlockSpec((1, 1, N_CLASS), lambda b: (b, 0, 0)),
        compiler_params=pltpu.CompilerParams(dimension_semantics=("parallel",)),
        cost_estimate=pl.CostEstimate(flops=flops, transcendentals=transcendentals,
                                      bytes_accessed=bytes_accessed),
    )(x_in, w_bd, bias_fold, pt, w_lin_perm, b_lin)
    return out.reshape(BATCH, N_CLASS)


def fbcnet_reference(x, params):
    """Pure-JAX fp32 reference of the same forward pass (for validation)."""
    w_scb, b_scb, bn_scale, bn_shift, w_lin, b_lin = params
    y = jnp.einsum('bmc,nbct->nbmt', w_scb, x) + b_scb[None, :, :, None]
    y = y * bn_scale[None, :, :, None] + bn_shift[None, :, :, None]
    y = y * jax.nn.sigmoid(y)
    yr = y.reshape(BATCH, NBM, STRIDE, SEG)
    var = jnp.var(yr, axis=-1, ddof=1)
    feat = jnp.log(jnp.clip(var, 1e-6, 1e6)).reshape(BATCH, FEAT)
    logits = feat @ w_lin.T + b_lin
    return jax.nn.log_softmax(logits, axis=-1)


def _renorm(w, max_norm, axis):
    """torch.renorm-style max-norm constraint (Conv2dWithConstraint /
    LinearWithConstraint), applied host-side at parameter setup."""
    n = jnp.sqrt(jnp.sum(w * w, axis=axis, keepdims=True))
    return w * jnp.minimum(1.0, max_norm / jnp.maximum(n, 1e-12))


def make_params(key):
    ks = jax.random.split(key, 8)
    # Grouped conv weight: torch (m*n_band, 1, n_channel, 1) -> (n_band, m, n_channel)
    w_scb = jax.random.normal(ks[0], (N_BAND, M, N_CHANNEL), jnp.float32) * 0.3
    w_scb = _renorm(w_scb, 2.0, axis=-1)                       # max_norm=2 per filter
    b_scb = jax.random.normal(ks[1], (N_BAND, M), jnp.float32) * 0.1
    # BatchNorm2d params / running stats (eval mode), folded to scale/shift.
    # TODO(synk): training-mode BN (batch statistics) not implemented; eval-mode semantics used.
    gamma = 1.0 + 0.1 * jax.random.normal(ks[2], (N_BAND, M), jnp.float32)
    beta = 0.1 * jax.random.normal(ks[3], (N_BAND, M), jnp.float32)
    r_mean = 0.1 * jax.random.normal(ks[4], (N_BAND, M), jnp.float32)
    r_var = jnp.abs(jax.random.normal(ks[5], (N_BAND, M), jnp.float32)) + 0.5
    bn_scale = gamma / jnp.sqrt(r_var + 1e-5)
    bn_shift = beta - r_mean * bn_scale
    # Linear: torch shape (n_class, feat), max_norm=0.5 per output row.
    w_lin = jax.random.normal(ks[6], (N_CLASS, FEAT), jnp.float32) * 0.05
    w_lin = _renorm(w_lin, 0.5, axis=-1)
    b_lin = (0.1 * jax.random.normal(ks[7], (N_CLASS,), jnp.float32)).reshape(1, N_CLASS)
    return (w_scb, b_scb, bn_scale, bn_shift, w_lin, b_lin)


if __name__ == "__main__":
    key = jax.random.PRNGKey(0)
    kx, kp = jax.random.split(key)
    x = jax.random.normal(kx, (BATCH, N_BAND, N_CHANNEL, N_TIME), jnp.float32)
    params = make_params(kp)
    kernel_params = fold_params(params)

    out = jax.block_until_ready(fbcnet_forward(x, kernel_params))
    ref = fbcnet_reference(x, params)

    assert out.shape == (BATCH, N_CLASS)
    # bf16 MXU operands (per perf review) vs. the fp32 reference -> relaxed tolerance.
    assert bool(jnp.allclose(out, ref, rtol=5e-2, atol=5e-2)), (out, ref)
    print("KERNEL_OK")
</pallas_src>

<mosaic_0001>
module attributes {stable_mosaic.version = 11 : i64} {
  func.func @fbcnet_kernel(%arg0: i32, %arg1: memref<32x16xbf16, #tpu.memory_space<vmem>>, %arg2: memref<16x32xbf16, #tpu.memory_space<vmem>>, %arg3: memref<1x32xf32, #tpu.memory_space<vmem>>, %arg4: memref<4x32xf32, #tpu.memory_space<vmem>>, %arg5: memref<128x2xbf16, #tpu.memory_space<vmem>>, %arg6: memref<1x2xf32, #tpu.memory_space<vmem>>, %arg7: memref<1x1x2xf32, #tpu.memory_space<vmem>>) attributes {dimension_semantics = [#tpu.dimension_semantics<parallel>], iteration_bounds = array<i64: 2>, scalar_prefetch = 0 : i64, scratch_operands = 0 : i64, tpu.core_type = #tpu.core_type<tc>, window_params = [{transform_indices = @transform_0, window_bounds = array<i64: 32, 16>}, {pipeline_mode = #tpu.pipeline_mode<synchronous>, transform_indices = @transform_1, window_bounds = array<i64: 16, 32>}, {pipeline_mode = #tpu.pipeline_mode<synchronous>, transform_indices = @transform_2, window_bounds = array<i64: 1, 32>}, {pipeline_mode = #tpu.pipeline_mode<synchronous>, transform_indices = @transform_3, window_bounds = array<i64: 4, 32>}, {pipeline_mode = #tpu.pipeline_mode<synchronous>, transform_indices = @transform_4, window_bounds = array<i64: 128, 2>}, {pipeline_mode = #tpu.pipeline_mode<synchronous>, transform_indices = @transform_5, window_bounds = array<i64: 1, 2>}, {transform_indices = @transform_6, window_bounds = array<i64: 1, 1, 2>}]} {
    %c0 = arith.constant 0 : index
    %c0_0 = arith.constant 0 : index
    %0 = vector.load %arg1[%c0, %c0_0] : memref<32x16xbf16, #tpu.memory_space<vmem>>, vector<32x16xbf16>
    %c0_1 = arith.constant 0 : index
    %c0_2 = arith.constant 0 : index
    %1 = vector.load %arg2[%c0_1, %c0_2] : memref<16x32xbf16, #tpu.memory_space<vmem>>, vector<16x32xbf16>
    %cst = arith.constant dense<0.000000e+00> : vector<32x32xf32>
    %2 = tpu.matmul %0, %1, %cst {dimension_numbers = #tpu.dot_dimension_numbers<[1], [0], [0], [1], [0, 0, 1, 1], [], []>} : vector<32x16xbf16>, vector<16x32xbf16>, vector<32x32xf32> -> vector<32x32xf32>
    %c0_3 = arith.constant 0 : index
    %c0_4 = arith.constant 0 : index
    %3 = vector.load %arg3[%c0_3, %c0_4] : memref<1x32xf32, #tpu.memory_space<vmem>>, vector<1x32xf32>
    %4 = vector.broadcast %3 : vector<1x32xf32> to vector<32x32xf32>
    %5 = arith.addf %2, %4 : vector<32x32xf32>
    %6 = arith.negf %5 : vector<32x32xf32>
    %7 = math.exp %6 : vector<32x32xf32>
    %cst_5 = arith.constant 1.000000e+00 : f32
    %8 = vector.broadcast %cst_5 : f32 to vector<32x32xf32>
    %9 = arith.addf %8, %7 : vector<32x32xf32>
    %10 = arith.divf %8, %9 : vector<32x32xf32>
    %11 = arith.mulf %5, %10 : vector<32x32xf32>
    %cst_6 = arith.constant dense<0.000000e+00> : vector<32xf32>
    %12 = vector.multi_reduction <add>, %11, %cst_6 [0] : vector<32x32xf32> to vector<32xf32>
    %13 = vector.shape_cast %12 : vector<32xf32> to vector<1x32xf32>
    %cst_7 = arith.constant 3.200000e+01 : f32
    %14 = vector.broadcast %cst_7 : f32 to vector<1x32xf32>
    %15 = arith.divf %13, %14 : vector<1x32xf32>
    %16 = vector.broadcast %15 : vector<1x32xf32> to vector<32x32xf32>
    %17 = arith.subf %11, %16 : vector<32x32xf32>
    %c0_8 = arith.constant 0 : index
    %c0_9 = arith.constant 0 : index
    %18 = vector.load %arg4[%c0_8, %c0_9] : memref<4x32xf32, #tpu.memory_space<vmem>>, vector<4x32xf32>
    %19 = arith.mulf %17, %17 : vector<32x32xf32>
    %20 = tpu.concatenate %17, %19 in 1 : vector<32x32xf32>, vector<32x32xf32> -> vector<32x64xf32>
    %cst_10 = arith.constant dense<0.000000e+00> : vector<4x64xf32>
    %21 = tpu.matmul %18, %20, %cst_10 {dimension_numbers = #tpu.dot_dimension_numbers<[1], [0], [0], [1], [0, 0, 1, 1], [], []>} : vector<4x32xf32>, vector<32x64xf32>, vector<4x64xf32> -> vector<4x64xf32>
    %22 = vector.extract_strided_slice %21 {offsets = [0, 0], sizes = [4, 32], strides = [1, 1]} : vector<4x64xf32> to vector<4x32xf32>
    %23 = vector.extract_strided_slice %21 {offsets = [0, 32], sizes = [4, 32], strides = [1, 1]} : vector<4x64xf32> to vector<4x32xf32>
    %24 = arith.mulf %22, %22 : vector<4x32xf32>
    %cst_11 = arith.constant 1.250000e-01 : f32
    %25 = vector.broadcast %cst_11 : f32 to vector<4x32xf32>
    %26 = arith.mulf %24, %25 : vector<4x32xf32>
    %27 = arith.subf %23, %26 : vector<4x32xf32>
    %cst_12 = arith.constant 0.142857149 : f32
    %28 = vector.broadcast %cst_12 : f32 to vector<4x32xf32>
    %29 = arith.mulf %27, %28 : vector<4x32xf32>
    %cst_13 = arith.constant 9.99999997E-7 : f32
    %cst_14 = arith.constant 1.000000e+06 : f32
    %30 = vector.broadcast %cst_13 : f32 to vector<4x32xf32>
    %31 = arith.maximumf %30, %29 : vector<4x32xf32>
    %32 = vector.broadcast %cst_14 : f32 to vector<4x32xf32>
    %33 = arith.minimumf %32, %31 : vector<4x32xf32>
    %34 = math.log %33 : vector<4x32xf32>
    %35 = arith.truncf %34 : vector<4x32xf32> to vector<4x32xbf16>
    %c0_15 = arith.constant 0 : index
    %c0_16 = arith.constant 0 : index
    %36 = vector.load %arg6[%c0_15, %c0_16] : memref<1x2xf32, #tpu.memory_space<vmem>>, vector<1x2xf32>
    %37 = vector.extract_strided_slice %35 {offsets = [0, 0], sizes = [1, 32], strides = [1, 1]} : vector<4x32xbf16> to vector<1x32xbf16>
    %c0_17 = arith.constant 0 : index
    %c0_18 = arith.constant 0 : index
    %38 = vector.load %arg5[%c0_17, %c0_18] : memref<128x2xbf16, #tpu.memory_space<vmem>>, vector<32x2xbf16>
    %cst_19 = arith.constant dense<0.000000e+00> : vector<1x2xf32>
    %39 = tpu.matmul %37, %38, %cst_19 {dimension_numbers = #tpu.dot_dimension_numbers<[1], [0], [0], [1], [0, 0, 1, 1], [], []>} : vector<1x32xbf16>, vector<32x2xbf16>, vector<1x2xf32> -> vector<1x2xf32>
    %40 = arith.addf %36, %39 : vector<1x2xf32>
    %41 = vector.extract_strided_slice %35 {offsets = [1, 0], sizes = [1, 32], strides = [1, 1]} : vector<4x32xbf16> to vector<1x32xbf16>
    %c32 = arith.constant 32 : index
    %c0_20 = arith.constant 0 : index
    %42 = vector.load %arg5[%c32, %c0_20] : memref<128x2xbf16, #tpu.memory_space<vmem>>, vector<32x2xbf16>
    %cst_21 = arith.constant dense<0.000000e+00> : vector<1x2xf32>
    %43 = tpu.matmul %41, %42, %cst_21 {dimension_numbers = #tpu.dot_dimension_numbers<[1], [0], [0], [1], [0, 0, 1, 1], [], []>} : vector<1x32xbf16>, vector<32x2xbf16>, vector<1x2xf32> -> vector<1x2xf32>
    %44 = arith.addf %40, %43 : vector<1x2xf32>
    %45 = vector.extract_strided_slice %35 {offsets = [2, 0], sizes = [1, 32], strides = [1, 1]} : vector<4x32xbf16> to vector<1x32xbf16>
    %c64 = arith.constant 64 : index
    %c0_22 = arith.constant 0 : index
    %46 = vector.load %arg5[%c64, %c0_22] : memref<128x2xbf16, #tpu.memory_space<vmem>>, vector<32x2xbf16>
    %cst_23 = arith.constant dense<0.000000e+00> : vector<1x2xf32>
    %47 = tpu.matmul %45, %46, %cst_23 {dimension_numbers = #tpu.dot_dimension_numbers<[1], [0], [0], [1], [0, 0, 1, 1], [], []>} : vector<1x32xbf16>, vector<32x2xbf16>, vector<1x2xf32> -> vector<1x2xf32>
    %48 = arith.addf %44, %47 : vector<1x2xf32>
    %49 = vector.extract_strided_slice %35 {offsets = [3, 0], sizes = [1, 32], strides = [1, 1]} : vector<4x32xbf16> to vector<1x32xbf16>
    %c96 = arith.constant 96 : index
    %c0_24 = arith.constant 0 : index
    %50 = vector.load %arg5[%c96, %c0_24] : memref<128x2xbf16, #tpu.memory_space<vmem>>, vector<32x2xbf16>
    %cst_25 = arith.constant dense<0.000000e+00> : vector<1x2xf32>
    %51 = tpu.matmul %49, %50, %cst_25 {dimension_numbers = #tpu.dot_dimension_numbers<[1], [0], [0], [1], [0, 0, 1, 1], [], []>} : vector<1x32xbf16>, vector<32x2xbf16>, vector<1x2xf32> -> vector<1x2xf32>
    %52 = arith.addf %48, %51 : vector<1x2xf32>
    %cst_26 = arith.constant dense<0xFF800000> : vector<1xf32>
    %53 = vector.multi_reduction <maximumf>, %52, %cst_26 [1] : vector<1x2xf32> to vector<1xf32>
    %54 = vector.shape_cast %53 : vector<1xf32> to vector<1x1xf32>
    %55 = vector.broadcast %54 : vector<1x1xf32> to vector<1x2xf32>
    %56 = arith.subf %52, %55 : vector<1x2xf32>
    %57 = math.exp %56 : vector<1x2xf32>
    %cst_27 = arith.constant dense<0.000000e+00> : vector<1xf32>
    %58 = vector.multi_reduction <add>, %57, %cst_27 [1] : vector<1x2xf32> to vector<1xf32>
    %59 = vector.shape_cast %58 : vector<1xf32> to vector<1x1xf32>
    %60 = math.log %59 : vector<1x1xf32>
    %61 = vector.broadcast %60 : vector<1x1xf32> to vector<1x2xf32>
    %62 = arith.subf %56, %61 : vector<1x2xf32>
    %c0_28 = arith.constant 0 : index
    %c0_29 = arith.constant 0 : index
    %c0_30 = arith.constant 0 : index
    %63 = vector.load %arg7[%c0_28, %c0_29, %c0_30] : memref<1x1x2xf32, #tpu.memory_space<vmem>>, vector<1x1x2xf32>
    %64 = vector.shape_cast %63 : vector<1x1x2xf32> to vector<1x2xf32>
    %65 = vector.shape_cast %62 : vector<1x2xf32> to vector<1x1x2xf32>
    tpu.vector_store %arg7[%c0_28, %c0_29, %c0_30], %65 {strides = array<i32>} : memref<1x1x2xf32, #tpu.memory_space<vmem>>, vector<1x1x2xf32>,
    return
  }
  func.func @transform_0(%arg0: i32) -> (i32, i32) {
    %c0_i32 = arith.constant 0 : i32
    %c0_i32_0 = arith.constant 0 : i32
    return %arg0, %c0_i32 : i32, i32
  }
  func.func @transform_1(%arg0: i32) -> (i32, i32) {
    %c0_i32 = arith.constant 0 : i32
    %c0_i32_0 = arith.constant 0 : i32
    %c0_i32_1 = arith.constant 0 : i32
    return %c0_i32, %c0_i32_0 : i32, i32
  }
  func.func @transform_2(%arg0: i32) -> (i32, i32) {
    %c0_i32 = arith.constant 0 : i32
    %c0_i32_0 = arith.constant 0 : i32
    %c0_i32_1 = arith.constant 0 : i32
    return %c0_i32, %c0_i32_0 : i32, i32
  }
  func.func @transform_3(%arg0: i32) -> (i32, i32) {
    %c0_i32 = arith.constant 0 : i32
    %c0_i32_0 = arith.constant 0 : i32
    %c0_i32_1 = arith.constant 0 : i32
    return %c0_i32, %c0_i32_0 : i32, i32
  }
  func.func @transform_4(%arg0: i32) -> (i32, i32) {
    %c0_i32 = arith.constant 0 : i32
    %c0_i32_0 = arith.constant 0 : i32
    %c0_i32_1 = arith.constant 0 : i32
    return %c0_i32, %c0_i32_0 : i32, i32
  }
  func.func @transform_5(%arg0: i32) -> (i32, i32) {
    %c0_i32 = arith.constant 0 : i32
    %c0_i32_0 = arith.constant 0 : i32
    %c0_i32_1 = arith.constant 0 : i32
    return %c0_i32, %c0_i32_0 : i32, i32
  }
  func.func @transform_6(%arg0: i32) -> (i32, i32, i32) {
    %c0_i32 = arith.constant 0 : i32
    %c0_i32_0 = arith.constant 0 : i32
    %c0_i32_1 = arith.constant 0 : i32
    return %arg0, %c0_i32, %c0_i32_0 : i32, i32, i32
  }
}

</mosaic_0001>

<bundles_post_ra>
// kernel: tpu_custom_call.1
= control target key start
LH: loop header
LB: loop body
LE: loop exit
PB: predicated region body
PF: predicated region fallthrough
CT: control target
= control target key end

     0   :  { %11 = vsyncpa [#allocation3], 0  ;;  %s1311_s0 = inlined_call_operand.vmem [shape: bf16[64,16], index: 0, kind: input, shape index: {}]   ;;  %s1312_s1 = inlined_call_operand.vmem [shape: bf16[16,32], index: 1, kind: input, shape index: {}]   ;;  %s1313_s2 = inlined_call_operand.vmem [shape: f32[1,32], index: 2, kind: input, shape index: {}]   ;;  %s1314_s3 = inlined_call_operand.vmem [shape: f32[4,32], index: 3, kind: input, shape index: {}]   ;;  %s1315_s4 = inlined_call_operand.vmem [shape: bf16[128,2], index: 4, kind: input, shape index: {}]   ;;  %s1316_s5 = inlined_call_operand.vmem [shape: f32[1,2], index: 5, kind: input, shape index: {}]   ;;  %s1317_s6 = inlined_call_operand.hbm [shape: f32[2,1,2], index: 6, kind: output, shape index: {}]  }
   0x1   :  { %13 = vsyncpa [#allocation3 + $0x1], 0  ;;  %s1142_s21 = smov 0   ;;  %s1144_s22 = smov 0  }
   0x2   :  { %s1146_s23 = smov 0   ;;  %s1148_s24 = smov 0  }
   0x3 LB: > { %s1163_s25 = sadd.s32 4294967295, %s1099_s24   ;;  %s833_s26 = sadd.s32 4294967294, %s1099_s24   ;;  %s1099_s24 = sphi %s1148_s24, %s1323_s24   ;;  %s1095_s23 = sphi %s1146_s23, %s1322_s23   ;;  %s1091_s22 = sphi %s1144_s22, %s1321_s22   ;;  %s1087_s21 = sphi %s1142_s21, %s1320_s21  }
   0x4   : > { %s1167_s27 = sadd.s32 1, %s1099_s24   ;;  %s157_s28 = sadd.s32 1, %s1095_s23 }
   0x5   : > { %s154_s29 = ssub.s32 %s1099_s24, %s1167_s27  ;;  %p167_p0 = scmp.ne.s32.totalorder %s1095_s23, %s1091_s22 }
   0x6   : > { %p155_p1 = scmp.eq.s32.totalorder %s154_s29, 0  ;;  %p168_p2 = scmp.eq.s32.totalorder %s1163_s25, 1 }
   0x7   : > { %p173_p3 = scmp.ne.s32.totalorder %s1091_s22, %s1087_s21  ;;  %p174_p4 = scmp.eq.s32.totalorder %s833_s26, 1 }
   0x8   : > { %s1178_s30 = scalar_select %p155_p1, %s1095_s23, %s157_s28  }
   0x9   : > { %p1180_p5 = por %p168_p2, %p167_p0  ;;  %p1184_p6 = por %p174_p4, %p173_p3 }
   0xa   : > { %p836_p7 = scmp.ge.s32.totalorder %s1099_s24, 1  ;;  %p216_p8 = scmp.lt.s32.totalorder %s1099_s24, 3 }
   0xc   : > { %p217_p9 = pnand %p836_p7, %p216_p8 }
   0xd   : > { %v1004_v0 = vld [vmem:[%s1312_s1] sm:$0xff] (!%p217_p9)   ;;  %s837_s11 = sshll.u32 (!%p217_p9), %s1163_s25, 2  ;;  %vm281_vm0 = vcmask (!%p217_p9), 130048   ;;  %vm365_vm1 = vcmask (!%p217_p9), 261120   ;;  %v1101_v45 = vmov (!%p217_p9), 0.0|0.0   ;;  %vm1102_vm2 = vmmov (!%p217_p9), 0  }
   0xe   : > { %220 = sbr.rel (%p217_p9) target bundleno = 1464 (0x5b8), region = 44  ;;  %p246_p10 = scmp.lt.s32.totalorder (!%p217_p9), %s837_s11, 7  ;;  %885 = vmatprep.subr.bf16.mxu1 (!%p217_p9), %v1004_v0  ;;  %v839_v3 = vld [vmem:[%s1313_s2] ss:$0 sm:$0xff] (!%p217_p9)  ;;  %v1103_v56 = vmov (!%p217_p9), 0.0   ;;  %vm751_vm3 = vcmask (!%p217_p9), 8192  }
   0xf   : > { %886 = vmatpush3.bf16.msra.mxu1 (!%p217_p9), %v1004_v0  ;;  %910 = vmatprep.subr.bf16.mxu0 (!%p217_p9), %v1103_v56  ;;  %s1104_s18 = smov (!%p217_p9), 32   ;;  %s1105_s14 = smov (!%p217_p9), 96  }
  0x10   : > { %934 = vmatprep.subr.bf16.mxu1 (!%p217_p9), %v1101_v45  ;;  %914 = vmatprep.mubr.msk.bf16.mxu0 (!%p217_p9), %vm1102_vm2, %v1103_v56  ;;  %s243_s10 = sand.u32 (!%p217_p9), 1, %s1091_s22  }
  0x11   : > { %s766_s17 = scalar_lea.sflag (!%p217_p9), [#allocation3], %s243_s10 }
  0x15   : > { %s1325_s11 = smov (!%p246_p10, %s837_s11), 7 }
  0x16   : > { %s838_s12 = sshll.u32 %s1325_s11, 2  ;;  %s862_s11 = sshll.u32 %s1163_s25, 4 }
  0x17   : > { %s249_s15 = scalar_lea.vmem %s1311_s0, %s838_s12  ;;  %s244_s12 = scalar_lea.vmem [#allocation2], %s243_s10 }
  0x18   : > { %v1005_v1 = vld [vmem:[%s249_s15] sm:$0xff]   ;;  %v1006_v2 = vld [vmem:[%s249_s15 + $0x8] sm:$0xff]   ;;  %s778_s13 = sshll.u32 %s244_s12, 4  ;;  %s1268_s16 = scalar_lea.hbm %s1317_s6, %s862_s11  ;;  %s1270_s13 = int_to_ptr.vmem [resolvable:$true] %s778_s13 }
  0x19   : > { %887 = vmatprep.mubr.msk.bf16.mxu1 %vm281_vm0, %v1005_v1  ;;  %s1106_s25 = smov [#allocation2]  }
  0x1a   : > { %888 = vmatmul.mubr.msk.bf16.vlgmr.msra.gmra.mrb[0].mxu1 %vm281_vm0, %v1006_v2  ;;  %s1041_s19 = sshll.u32 %s1106_s25, 4  ;;  %s1042_s19 = int_to_ptr.vmem [resolvable:$false] %s1041_s19 }
  0x1b   : > { %899 = vmatprep.mubr.msk.f32.mxu1 %vm1102_vm2, %v1103_v56  ;;  %s1043_s20 = scalar_lea.vmem %s1042_s19, 32  ;;  %p1044_p0 = scmp.lt.s32.totalorder %s1270_s13, %s1042_s19 }
  0xed   : > { %v889_v4 = vpop.f32.mrb[0].mxu1 }
  0xee   : > { %v331_v5 = vadd.f32 %v889_v4, %v839_v3  ;;  %v322_v6 = vpop.f32.mrb[1].mxu1 }
  0xef   : > { %v323_v7 = vadd.f32 %v839_v3, %v322_v6  ;;  %v890_v8 = vpop.f32.mrb[2].mxu1  ;;  %v385_v6 = vld [vmem:[%s1314_s3] sm:$0xf] }
  0xf0   : > { %v847_v9 = vmul.f32 -1.442695, %v331_v5  ;;  %v334_v10 = vadd.f32 %v890_v8, %v839_v3  ;;  %v325_v11 = vpop.f32.mrb[3].mxu1 }
  0xf1   : > { %v845_v12 = vmul.f32 -1.442695, %v323_v7  ;;  %v326_v13 = vadd.f32 %v839_v3, %v325_v11  ;;  %v1007_v11 = vld [vmem:[%s1315_s4 + $0x10] sm:$0xff]  }
  0xf2   : > { %1015 = vpow2.f32 %v847_v9  ;;  %v848_v14 = vmul.f32 -1.442695, %v334_v10  ;;  %911 = vmatpush3.bf16.msra.mxu0 %v1007_v11 }
  0xf3   : > { %1017 = vpow2.f32 %v845_v12  ;;  %v846_v15 = vmul.f32 -1.442695, %v326_v13  ;;  %v1008_v12 = vld [vmem:[%s1315_s4] sm:$0xff]   ;;  %912 = vmatprep.subr.bf16.mxu0 %v1103_v56 }
  0xf4   : > { %1019 = vpow2.f32 %v848_v14 }
  0xf5   : > { %1021 = vpow2.f32 %v846_v15 }
  0xfc   : > { %v1016_v16 = vpop.eup %1015 }
  0xfd   : > { %v1018_v17 = vpop.eup %1017  ;;  %v351_v18 = vadd.f32 1.0, %v1016_v16 }
  0xfe   : > { %v1020_v19 = vpop.eup %1019  ;;  %v349_v20 = vadd.f32 1.0, %v1018_v17 }
  0xff   : > { %v1022_v21 = vpop.eup %1021  ;;  %1023 = vrcp.f32 %v351_v18  ;;  %v352_v22 = vadd.f32 1.0, %v1020_v19  ;;  %v1010_v19 = vld [vmem:[%s1315_s4 + $0x8] sm:$0xff]  }
 0x100   : > { %1025 = vrcp.f32 %v349_v20  ;;  %v350_v23 = vadd.f32 1.0, %v1022_v21 }
 0x101   : > { %1027 = vrcp.f32 %v352_v22 }
 0x102   : > { %1029 = vrcp.f32 %v350_v23 }
 0x109   : > { %v1024_v24 = vpop.eup %1023 }
 0x10a   : > { %v1026_v25 = vpop.eup %1025  ;;  %v363_v29 = vmul.f32 %v1024_v24, %v331_v5 }
 0x10b   : > { %v1028_v26 = vpop.eup %1027  ;;  %v361_v27 = vmul.f32 %v1026_v25, %v323_v7 }
 0x10c   : > { %v1030_v28 = vpop.eup %1029  ;;  %v364_v32 = vmul.f32 %v1028_v26, %v334_v10  ;;  %v369_v35 = vsel %vm365_vm1, %v363_v29, 0.0  ;;  %v1011_v26 = vld [vmem:[%s1315_s4 + $0x20] sm:$0xff]  }
 0x10d   : > { %v362_v30 = vmul.f32 %v1030_v28, %v326_v13  ;;  %v366_v31 = vsel %vm365_vm1, %v361_v27, 0.0  ;;  %v1009_v13 = vld [vmem:[%s1315_s4 + $0x18] sm:$0xff]   ;;  %v1012_v28 = vld [vmem:[%s1315_s4 + $0x28] sm:$0xff]  }
 0x10e   : > { %v371_v37 = vsel %vm365_vm1, %v364_v32, 0.0  ;;  %913 = vmatpush3.bf16.msra.mxu0 %v1009_v13 }
 0x10f   : > { %v367_v33 = vsel %vm365_vm1, %v362_v30, 0.0  ;;  %918 = vmatprep.subr.bf16.mxu0 %v1103_v56 }
 0x110   : > { %v368_v34 = vadd.f32 %v367_v33, %v366_v31 }
 0x112   : > { %v370_v36 = vadd.f32 %v369_v35, %v368_v34 }
 0x114   : > { %v372_v38 = vadd.f32 %v371_v37, %v370_v36 }
 0x116   : > { %v373_v39 = vrot.slane %v372_v38, 4 }
 0x118   : > { %v374_v40 = vadd.f32 %v373_v39, %v372_v38  ;;  %v496_v38 = vld [vmem:[%s1316_s5] sm:$0x1] }
 0x11a   : > { %v375_v41 = vrot.slane %v374_v40, 2 }
 0x11c   : > { %v376_v42 = vadd.f32 %v375_v41, %v374_v40 }
 0x11e   : > { %v377_v43 = vrot.slane %v376_v42, 1 }
 0x120   : > { %v378_v44 = vadd.f32 %v377_v43, %v376_v42 }
 0x122   : > { %v380_v46 = vmul.f32 0.03125, %v378_v44 }
 0x124   : > { %v382_v47 = vsub.f32 %v362_v30, %v380_v46  ;;  %v381_v48 = vsub.f32 %v361_v27, %v380_v46  ;;  %v383_v49 = vsub.f32 %v363_v29, %v380_v46  ;;  %v384_v50 = vsub.f32 %v364_v32, %v380_v46  ;;  %v1013_v30 = vld [vmem:[%s1315_s4 + $0x30] sm:$0xff]   ;;  %v1014_v32 = vld [vmem:[%s1315_s4 + $0x38] sm:$0xff]  }
 0x126   : > { %v386_v51 = vmul.f32 %v381_v48, %v381_v48  ;;  %v387_v52 = vmul.f32 %v382_v47, %v382_v47  ;;  %v388_v54 = vmul.f32 %v383_v49, %v383_v49  ;;  %v389_v55 = vmul.f32 %v384_v50, %v384_v50 }
 0x128   : > { %v994_v53 = vpack.i.bf16 %v387_v52, %v386_v51  ;;  %v999_v57 = vpack.i.bf16 %v389_v55, %v388_v54 }
 0x12a   : > { %995 = vrot.lane.b32.xlu0 %v994_v53, %s1104_s18 }
 0x12e   : > { %1000 = vrot.lane.b32.xlu0 %v999_v57, %s1104_s18 }
 0x19c   : > { %v996_v58 = vpop.permute.xlu0 %995 }
 0x19d   : > { %v998_v59 = vunpack.i.h.bf16 %v996_v58  ;;  %v997_v60 = vunpack.i.l.bf16 %v996_v58 }
 0x19f   : > { %v407_v61 = vsel %vm365_vm1, %v382_v47, %v998_v59  ;;  %v406_v62 = vsel %vm365_vm1, %v381_v48, %v997_v60 }
 0x1a0   : > { %v935_v63 = vpack.c.bf16 %v407_v61, %v406_v62  ;;  %v1001_v0 = vpop.permute.xlu0 %1000 }
 0x1a1   : > { %v1003_v1 = vunpack.i.h.bf16 %v1001_v0  ;;  %v1002_v2 = vunpack.i.l.bf16 %v1001_v0 }
 0x1a2   : > { %936 = vmatpush3.bf16.msra.mxu1 %v935_v63 }
 0x1a3   : > { %v409_v3 = vsel %vm365_vm1, %v384_v50, %v1003_v1  ;;  %v408_v4 = vsel %vm365_vm1, %v383_v49, %v1002_v2  ;;  %937 = vmatprep.subr.bf16.mxu1 %v1101_v45 }
 0x1a4   : > { %v938_v5 = vpack.c.bf16 %v409_v3, %v408_v4 }
 0x1a6   : > { %939 = vmatpush3.bf16.msra.mxu1 %v938_v5 }
 0x1a7   : > { %902 = vmatprep.subr.bf16.mxu1 %v1103_v56 }
 0x1a9   : > { %900 = vmatmul.mubr.msk.f32.vlgmr.msra.gmra.mrb[4].mxu1 %vm365_vm1, %v385_v6 }
 0x1aa   : > { %906 = vmatprep.mubr.msk.bf16.mxu1 %vm1102_vm2, %v1103_v56  ;;  %903 = vmatpush3.bf16.msra.mxu1 %v1008_v12 }
 0x1ab   : > { %904 = vmatprep.subr.bf16.mxu1 %v1103_v56 }
 0x1ae   : > { %905 = vmatpush3.bf16.msra.mxu1 %v1010_v19 }
 0x27c   : > { %v479_v7 = vpop.f32.mrb[4].mxu1 }
 0x27d   : > { %v483_v8 = vmul.f32 %v479_v7, %v479_v7  ;;  %v901_v9 = vpop.f32.mrb[5].mxu1 }
 0x27f   : > { %v484_v10 = vmul.f32 0.125, %v483_v8 }
 0x281   : > { %486 = vrot.lane.b32.xlu1 %v484_v10, %s1104_s18  ;;  %s1037_s18 = scalar_lea.vmem %s1270_s13, 16 }
 0x282   : > { %p1038_p11 = scmp.ne.s32.totalorder %s1270_s13, %s1037_s18  ;;  %p1045_p1 = scmp.lt.s32.totalorder %s1043_s20, %s1037_s18 }
 0x284   : > { %p1039_p12 = pnand %p1038_p11, %p1180_p5  ;;  %p1046_p2 = por %p1045_p1, %p1044_p0 }
 0x286   : > { %p1040_p13 = pneg %p1039_p12 }
 0x288   : > { %p1047_p3 = pnand %p1046_p2, %p1040_p13 }
 0x2f3   : > { %v487_v14 = vpop.permute.xlu1 %486 }
 0x2f4   : > { %v489_v15 = vsub.f32 %v479_v7, %v487_v14 }
 0x2f6   : > { %v490_v16 = vmul.f32 0.14285715, %v489_v15 }
 0x2f8   : > { %v491_v17 = vmax.f32 %v490_v16, 1e-06 }
 0x2fa   : > { %v492_v18 = vmin.f32 %v491_v17, 1000000.0 }
 0x2fc   : > { %1031 = vlog2.f32 %v492_v18 }
 0x306   : > { %v1032_v20 = vpop.eup %1031 }
 0x307   : > { %v494_v21 = vmul.f32 0.6931472, %v1032_v20 }
 0x309   : > { %v495_v22 = vpack.c.bf16 %v494_v21, %v494_v21 }
 0x30b   : > { %v629_v23 = vrot.slane %v495_v22, 1  ;;  %v565_v24 = vshrl.u32 %v495_v22, 16 }
 0x30d   : > { %630 = vrot.lane.b32.xlu0 %v629_v23, %s1105_s14  ;;  %567 = vrot.lane.b32.xlu1 %v565_v24, %s1105_s14  ;;  %v692_v25 = vrot.slane %v565_v24, 1 }
 0x311   : > { %502 = vrot.lane.b32.xlu1 %v495_v22, %s1105_s14  ;;  %693 = vrot.lane.b32.xlu0 %v692_v25, %s1105_s14 }
 0x37f   : > { %v568_v27 = vpop.permute.xlu1 %567  ;;  %v631_v31 = vpop.permute.xlu0 %630 }
 0x380   : > { %915 = vmatmul.mubr.msk.bf16.vlgmr.msra.gmra.mrb[0].mxu0 %vm365_vm1, %v568_v27 }
 0x381   : > { %919 = vmatpush3.bf16.msra.mxu0 %v1011_v26  ;;  %922 = vmatprep.mubr.msk.bf16.mxu0 %vm1102_vm2, %v1103_v56 }
 0x382   : > { %920 = vmatprep.subr.bf16.mxu0 %v1103_v56 }
 0x383   : > { %v503_v29 = vpop.permute.xlu1 %502  ;;  %v694_v33 = vpop.permute.xlu0 %693 }
 0x384   : > { %907 = vmatmul.mubr.msk.bf16.vlgmr.msra.gmra.mrb[8].mxu1 %vm365_vm1, %v503_v29 }
 0x385   : > { %921 = vmatpush3.bf16.msra.mxu0 %v1012_v28 }
 0x386   : > { %926 = vmatprep.subr.bf16.mxu0 %v1103_v56 }
 0x38c   : > { %923 = vmatmul.mubr.msk.bf16.vlgmr.msra.gmra.mrb[0].mxu0 %vm365_vm1, %v631_v31 }
 0x38d   : > { %927 = vmatpush3.bf16.msra.mxu0 %v1013_v30  ;;  %930 = vmatprep.mubr.msk.bf16.mxu0 %vm1102_vm2, %v1103_v56 }
 0x38e   : > { %928 = vmatprep.subr.bf16.mxu0 %v1103_v56 }
 0x391   : > { %929 = vmatpush3.bf16.msra.mxu0 %v1014_v32 }
 0x398   : > { %931 = vmatmul.mubr.msk.bf16.vlgmr.msra.gmra.mrb[0].mxu0 %vm365_vm1, %v694_v33 }
 0x457   : > { %v553_v34 = vpop.f32.mrb[8].mxu1 }
 0x458   : > { %v908_v35 = vpop.f32.mrb[9].mxu1  ;;  %v559_v39 = vadd.f32 %v553_v34, %v496_v38 }
 0x459   : > { %v556_v36 = vpop.f32.mrb[10].mxu1 }
 0x45a   : > { %v909_v37 = vpop.f32.mrb[11].mxu1 }
 0x46b   : > { %v744_v40 = vpop.f32.mrb[0].mxu0 }
 0x46c   : > { %v941_v41 = vadd.f32 %v744_v40, %v559_v39  ;;  %v932_v42 = vpop.f32.mrb[1].mxu0 }
 0x46d   : > { %v747_v43 = vpop.f32.mrb[2].mxu0 }
 0x46e   : > { %v933_v44 = vpop.f32.mrb[3].mxu0  ;;  %v752_v45 = vsel %vm751_vm3, %v941_v41, -inf }
 0x46f   : > { %753 = vmax.xlane.f32.xlu1 %v752_v45 }
 0x4fc   : > { %v754_v46 = vpop.xlane.xlu1 %753 }
 0x4fd   : > { %v755_v47 = vsub.f32 %v941_v41, %v754_v46 }
 0x4ff   : > { %v756_v48 = vmul.f32 1.442695, %v755_v47 }
 0x501   : > { %1033 = vpow2.f32 %v756_v48 }
 0x50b   : > { %v1034_v49 = vpop.eup %1033 }
 0x50c   : > { %v758_v50 = vsel %vm751_vm3, %v1034_v49, 0.0 }
 0x50d   : > { %759 = vadd.xlane.f32.xlu0 %v758_v50 }
 0x59a   : > { %v760_v51 = vpop.xlane.xlu0 %759 }
 0x59b   : > { %1035 = vlog2.f32 %v760_v51 }
 0x5a5   : > { %v1036_v52 = vpop.eup %1035 }
 0x5a6   : > { %v762_v53 = vmul.f32 0.6931472, %v1036_v52 }
 0x5a8   : > { %v763_v54 = vsub.f32 %v755_v47, %v762_v53 }
 0x5aa   : > { %764 = vst.msk [vmem:[%s244_s12] sm:$0x1] %vm751_vm3, %v763_v54 }
 0x5ab   : > { %1050 = shalt.err (!%p1047_p3)
}
 0x5ac   : > { %s1051_s26 = scalar_lea.hbm %s1268_s16, 16  ;;  %s1055_s9 = scalar_lea.hbm %s1317_s6, 32 }
 0x5ad   : > { %p1052_p4 = scmp.ne.s32.totalorder %s1268_s16, %s1051_s26  ;;  %p1056_p9 = scmp.lt.u32.totalorder %s1268_s16, %s1317_s6 }
 0x5ae   : > { %p1057_p10 = scmp.lt.u32.totalorder %s1055_s9, %s1051_s26  ;;  %p1059_p12 = scmp.lt.u32.totalorder %s1051_s26, %s1268_s16 }
 0x5af   : > { %p1053_p7 = pnand %p1052_p4, %p1180_p5 }
 0x5b0   : > { %p1058_p11 = por %p1057_p10, %p1056_p9 }
 0x5b1   : > { %p1054_p8 = pneg %p1053_p7 }
 0x5b2   : > { %p1060_p13 = por %p1059_p12, %p1058_p11 }
 0x5b4   : > { %p1061_p0 = pnand %p1060_p13, %p1054_p8 }
 0x5b6   : > { %1064 = shalt.err (!%p1061_p0)
}
 0x5b7   : > { %950 = dma.vmem_to_hbm [thread:$0]  (%p1180_p5), %s1270_s13, 16, %s1268_s16, %s766_s17  }
 0x5b8 PF: > { %p956_p1 = scmp.ge.s32.totalorder %s1099_s24, 2  ;;  %s790_s12 = sand.u32 1, %s1087_s21  }
 0x5b9   : > { %s791_s14 = scalar_lea.sflag [#allocation3], %s790_s12 }
 0x5ba   : > { %p953_p2 = pnand %p956_p1, %p1184_p6 }
 0x5bc   : > { %1082 = dma.done.wait (!%p953_p2), %s791_s14, 16  }
 0x5bd   : > { %1084 = vsyncadd (!%p953_p2), %s791_s14, 4294967280  ;;  %p16_p3 = scmp.ge.s32.totalorder %s1167_s27, 4   ;;  %s1320_s21 = smov %s1091_s22 }
 0x5be   : > { %s1321_s22 = smov %s1095_s23  ;;  %s1322_s23 = smov %s1178_s30 }
 0x5bf   : > { %s1323_s24 = smov %s1167_s27  ;;  %18 = sbr.rel (!%p16_p3) target bundleno = 3 (0x3), region = 79 }
 0x5c6   :  { %795 = vsyncpa [#allocation3], 1 }
 0x5c7   :  { %797 = vsyncpa [#allocation3 + $0x1], 1 }

</bundles_post_ra>
